<compile_context>
chip_gen: v7x
topology: tpu7x:2x2x1
jax: 0.10.0
libtpu: 0.0.40
codegen_flags: <defaults>
</compile_context>

<pallas_src>
import functools

import jax
import jax.numpy as jnp
from jax.experimental import pallas as pl
from jax.experimental.pallas import tpu as pltpu


def _gru_disc_kernel(x_ref, w_ref, b_ref, out_ref, *, T, Bp, I, H, O):
    """x_ref: (T*Bp, I) time-major flattened input, bf16.
    w_ref: bf16 weight slab (I+2H, 3H): rows [0:I)=Wcomb, [I:I+H)=Whh,
           [I+H:I+2H)=Wout (zero-padded to 3H columns).
    b_ref: f32 bias slab (3, 3H): row0=bcomb (with r/z hidden bias folded in),
           row1[:H]=bhh_n, row2[:O]=bout."""
    # Static, tile-aligned slices of the packed weight slab (one-time loads).
    wcomb = w_ref[:I, :]                     # (I, 3H) bf16
    whh = w_ref[I:I + H, :]                  # (H, 3H) bf16
    wout = w_ref[I + H:I + 2 * H, :O]        # (H, O)  bf16

    bcomb = b_ref[0:1, :]                    # (1, 3H) f32
    # Hoisted broadcast: done once, not per unrolled iteration.
    bhh_n = jnp.broadcast_to(b_ref[1:2, :H], (Bp, H))
    bout = b_ref[2:3, :O]                    # (1, O)

    # All h-independent work (embedding + GRU input projection, every
    # timestep) in ONE bf16 MXU matmul with f32 accumulation; kept in vregs.
    gi_all = (
        jnp.dot(x_ref[...], wcomb, preferred_element_type=jnp.float32)
        + bcomb
    )

    h = jnp.zeros((Bp, H), jnp.float32)
    for t in range(T):  # trace-time unroll; slices below are static + aligned
        gi = gi_all[t * Bp:(t + 1) * Bp, :]  # (Bp, 3H) input gates @ t
        gh = jnp.dot(h.astype(jnp.bfloat16), whh,
                     preferred_element_type=jnp.float32)  # (Bp, 3H)

        # PyTorch gate order (r, z, n); r and z share one packed sigmoid.
        # r/z hidden bias is already folded into gi; n-gate hidden bias stays
        # inside the r*(...) term per torch.nn.GRU semantics.
        rz = jax.nn.sigmoid(gi[:, :2 * H] + gh[:, :2 * H])
        r = rz[:, :H]
        z = rz[:, H:]
        n = jnp.tanh(gi[:, 2 * H:] + r * (gh[:, 2 * H:] + bhh_n))
        h = (1.0 - z) * n + z * h

    # h2o on the last timestep's hidden state (written once).
    o = (jnp.dot(h.astype(jnp.bfloat16), wout,
                 preferred_element_type=jnp.float32) + bout)
    out_ref[...] = o.astype(out_ref.dtype)


def discriminator_forward(x, params):
    """x: (B, T, input_size) float32 -> (B, output_size)"""
    B, T, I = x.shape
    wemb, bemb, wih, bih, whh, bhh, wout, bout = params
    H = whh.shape[0]
    O = wout.shape[1]

    # Fold the embedding Linear into the GRU input projection (done once):
    #   (x @ Wemb + bemb) @ Wih + bih == x @ (Wemb @ Wih) + (bemb @ Wih + bih)
    wcomb = wemb @ wih                       # (I, 3H)
    bcomb = bemb @ wih + bih                 # (1, 3H)
    # Fold the r/z part of the hidden bias into the combined input bias
    # (legal: sigmoid(i + b_i + h + b_h)); keep only the n-gate hidden bias.
    bcomb = bcomb.at[:, :2 * H].add(bhh[:, :2 * H])
    bhh_n = bhh[:, 2 * H:]                   # (1, H)

    # Pad batch to the sublane width (8) so vregs / MXU rows are full.
    Bp = max(8, ((B + 7) // 8) * 8)
    if Bp != B:
        x = jnp.pad(x, ((0, Bp - B), (0, 0), (0, 0)))

    # Time-major, flattened: whole input projection becomes one matmul.
    x_flat = jnp.transpose(x, (1, 0, 2)).reshape(T * Bp, I)
    x_flat = x_flat.astype(jnp.bfloat16)

    # Pack weights into one bf16 slab and biases into one f32 slab
    # (3 DMAs total instead of 7).
    wout_pad = jnp.zeros((H, 3 * H), jnp.float32).at[:, :O].set(wout)
    w_slab = jnp.concatenate([wcomb, whh, wout_pad], axis=0).astype(jnp.bfloat16)
    b_slab = jnp.zeros((3, 3 * H), jnp.float32)
    b_slab = b_slab.at[0].set(bcomb[0])
    b_slab = b_slab.at[1, :H].set(bhh_n[0])
    b_slab = b_slab.at[2, :O].set(bout[0])

    vmem = pl.BlockSpec(memory_space=pltpu.MemorySpace.VMEM)

    out = pl.pallas_call(
        functools.partial(_gru_disc_kernel, T=T, Bp=Bp, I=I, H=H, O=O),
        out_shape=jax.ShapeDtypeStruct((Bp, O), jnp.float32),
        in_specs=[vmem, vmem, vmem],
        out_specs=vmem,
    )(x_flat, w_slab, b_slab)

    return out[:B]


def reference_forward(x, params):
    """Pure-JAX f32 reference matching torch semantics (for verification)."""
    wemb, bemb, wih, bih, whh, bhh, wout, bout = params
    B, T, I = x.shape
    H = whh.shape[0]
    emb = x @ wemb + bemb                    # (B, T, N)
    h = jnp.zeros((B, H), jnp.float32)
    for t in range(T):
        gi = emb[:, t, :] @ wih + bih
        gh = h @ whh + bhh
        i_r, i_z, i_n = gi[:, :H], gi[:, H:2 * H], gi[:, 2 * H:]
        h_r, h_z, h_n = gh[:, :H], gh[:, H:2 * H], gh[:, 2 * H:]
        r = jax.nn.sigmoid(i_r + h_r)
        z = jax.nn.sigmoid(i_z + h_z)
        n = jnp.tanh(i_n + r * h_n)
        h = (1.0 - z) * n + z * h
    return h @ wout + bout


def make_params(key, input_size, num_neurons, hidden_size, output_size):
    ks = jax.random.split(key, 8)
    s = 0.1
    wemb = s * jax.random.normal(ks[0], (input_size, num_neurons), jnp.float32)
    bemb = s * jax.random.normal(ks[1], (1, num_neurons), jnp.float32)
    wih = s * jax.random.normal(ks[2], (num_neurons, 3 * hidden_size), jnp.float32)
    bih = s * jax.random.normal(ks[3], (1, 3 * hidden_size), jnp.float32)
    whh = s * jax.random.normal(ks[4], (hidden_size, 3 * hidden_size), jnp.float32)
    bhh = s * jax.random.normal(ks[5], (1, 3 * hidden_size), jnp.float32)
    wout = s * jax.random.normal(ks[6], (hidden_size, output_size), jnp.float32)
    bout = s * jax.random.normal(ks[7], (1, output_size), jnp.float32)
    return (wemb, bemb, wih, bih, whh, bhh, wout, bout)


if __name__ == "__main__":
    # small shapes: batch=4, seq=8, CHARMAP_LEN=32, num_neurons=32, hidden=32
    B, T, INPUT_SIZE = 4, 8, 32
    NUM_NEURONS, HIDDEN_SIZE, OUTPUT_SIZE = 32, 32, 1

    key = jax.random.PRNGKey(0)
    kx, kp = jax.random.split(key)
    x = jax.random.normal(kx, (B, T, INPUT_SIZE), jnp.float32)
    params = make_params(kp, INPUT_SIZE, NUM_NEURONS, HIDDEN_SIZE, OUTPUT_SIZE)

    out = discriminator_forward(x, params)
    out = jax.block_until_ready(out)

    ref = reference_forward(x, params)
    assert out.shape == (B, OUTPUT_SIZE), out.shape
    # bf16 MXU operands + weight folding perturb rounding vs the f32 reference;
    # tolerance loosened accordingly (recurrence error compounds over T).
    assert jnp.allclose(out, ref, atol=2e-2, rtol=2e-2), (out, ref)

    print("KERNEL_OK")
</pallas_src>

<mosaic_0001>
module attributes {stable_mosaic.version = 11 : i64} {
  func.func @_gru_disc_kernel(%arg0: memref<64x32xbf16, #tpu.memory_space<vmem>>, %arg1: memref<96x96xbf16, #tpu.memory_space<vmem>>, %arg2: memref<3x96xf32, #tpu.memory_space<vmem>>, %arg3: memref<8x1xf32, #tpu.memory_space<vmem>>) attributes {dimension_semantics = [], scalar_prefetch = 0 : i64, scratch_operands = 0 : i64, tpu.core_type = #tpu.core_type<tc>} {
    %c0 = arith.constant 0 : index
    %c0_0 = arith.constant 0 : index
    %0 = vector.load %arg1[%c0, %c0_0] : memref<96x96xbf16, #tpu.memory_space<vmem>>, vector<32x96xbf16>
    %c32 = arith.constant 32 : index
    %c0_1 = arith.constant 0 : index
    %1 = vector.load %arg1[%c32, %c0_1] : memref<96x96xbf16, #tpu.memory_space<vmem>>, vector<32x96xbf16>
    %c64 = arith.constant 64 : index
    %c0_2 = arith.constant 0 : index
    %2 = vector.load %arg1[%c64, %c0_2] : memref<96x96xbf16, #tpu.memory_space<vmem>>, vector<32x1xbf16>
    %c0_3 = arith.constant 0 : index
    %c0_4 = arith.constant 0 : index
    %3 = vector.load %arg2[%c0_3, %c0_4] : memref<3x96xf32, #tpu.memory_space<vmem>>, vector<1x96xf32>
    %c1 = arith.constant 1 : index
    %c0_5 = arith.constant 0 : index
    %4 = vector.load %arg2[%c1, %c0_5] : memref<3x96xf32, #tpu.memory_space<vmem>>, vector<1x32xf32>
    %5 = vector.shape_cast %4 : vector<1x32xf32> to vector<1x32xf32>
    %6 = vector.broadcast %5 : vector<1x32xf32> to vector<8x32xf32>
    %c2 = arith.constant 2 : index
    %c0_6 = arith.constant 0 : index
    %7 = vector.load %arg2[%c2, %c0_6] : memref<3x96xf32, #tpu.memory_space<vmem>>, vector<1x1xf32>
    %c0_7 = arith.constant 0 : index
    %c0_8 = arith.constant 0 : index
    %8 = vector.load %arg0[%c0_7, %c0_8] : memref<64x32xbf16, #tpu.memory_space<vmem>>, vector<64x32xbf16>
    %cst = arith.constant dense<0.000000e+00> : vector<64x96xf32>
    %9 = tpu.matmul %8, %0, %cst {dimension_numbers = #tpu.dot_dimension_numbers<[1], [0], [0], [1], [0, 0, 1, 1], [], []>} : vector<64x32xbf16>, vector<32x96xbf16>, vector<64x96xf32> -> vector<64x96xf32>
    %10 = vector.broadcast %3 : vector<1x96xf32> to vector<64x96xf32>
    %11 = arith.addf %9, %10 : vector<64x96xf32>
    %cst_9 = arith.constant 0.000000e+00 : f32
    %12 = vector.broadcast %cst_9 : f32 to vector<8x32xf32>
    %13 = vector.extract_strided_slice %11 {offsets = [0, 0], sizes = [8, 96], strides = [1, 1]} : vector<64x96xf32> to vector<8x96xf32>
    %14 = arith.truncf %12 : vector<8x32xf32> to vector<8x32xbf16>
    %cst_10 = arith.constant dense<0.000000e+00> : vector<8x96xf32>
    %15 = tpu.matmul %14, %1, %cst_10 {dimension_numbers = #tpu.dot_dimension_numbers<[1], [0], [0], [1], [0, 0, 1, 1], [], []>} : vector<8x32xbf16>, vector<32x96xbf16>, vector<8x96xf32> -> vector<8x96xf32>
    %16 = vector.extract_strided_slice %13 {offsets = [0, 0], sizes = [8, 64], strides = [1, 1]} : vector<8x96xf32> to vector<8x64xf32>
    %17 = vector.extract_strided_slice %15 {offsets = [0, 0], sizes = [8, 64], strides = [1, 1]} : vector<8x96xf32> to vector<8x64xf32>
    %18 = arith.addf %16, %17 : vector<8x64xf32>
    %19 = arith.negf %18 : vector<8x64xf32>
    %20 = math.exp %19 : vector<8x64xf32>
    %cst_11 = arith.constant 1.000000e+00 : f32
    %21 = vector.broadcast %cst_11 : f32 to vector<8x64xf32>
    %22 = arith.addf %21, %20 : vector<8x64xf32>
    %23 = arith.divf %21, %22 : vector<8x64xf32>
    %24 = vector.extract_strided_slice %23 {offsets = [0, 0], sizes = [8, 32], strides = [1, 1]} : vector<8x64xf32> to vector<8x32xf32>
    %25 = vector.extract_strided_slice %23 {offsets = [0, 32], sizes = [8, 32], strides = [1, 1]} : vector<8x64xf32> to vector<8x32xf32>
    %26 = vector.extract_strided_slice %13 {offsets = [0, 64], sizes = [8, 32], strides = [1, 1]} : vector<8x96xf32> to vector<8x32xf32>
    %27 = vector.extract_strided_slice %15 {offsets = [0, 64], sizes = [8, 32], strides = [1, 1]} : vector<8x96xf32> to vector<8x32xf32>
    %28 = arith.addf %27, %6 : vector<8x32xf32>
    %29 = arith.mulf %24, %28 : vector<8x32xf32>
    %30 = arith.addf %26, %29 : vector<8x32xf32>
    %31 = math.tanh %30 : vector<8x32xf32>
    %cst_12 = arith.constant 1.000000e+00 : f32
    %32 = vector.broadcast %cst_12 : f32 to vector<8x32xf32>
    %33 = arith.subf %32, %25 : vector<8x32xf32>
    %34 = arith.mulf %33, %31 : vector<8x32xf32>
    %35 = arith.mulf %25, %12 : vector<8x32xf32>
    %36 = arith.addf %34, %35 : vector<8x32xf32>
    %37 = vector.extract_strided_slice %11 {offsets = [8, 0], sizes = [8, 96], strides = [1, 1]} : vector<64x96xf32> to vector<8x96xf32>
    %38 = arith.truncf %36 : vector<8x32xf32> to vector<8x32xbf16>
    %cst_13 = arith.constant dense<0.000000e+00> : vector<8x96xf32>
    %39 = tpu.matmul %38, %1, %cst_13 {dimension_numbers = #tpu.dot_dimension_numbers<[1], [0], [0], [1], [0, 0, 1, 1], [], []>} : vector<8x32xbf16>, vector<32x96xbf16>, vector<8x96xf32> -> vector<8x96xf32>
    %40 = vector.extract_strided_slice %37 {offsets = [0, 0], sizes = [8, 64], strides = [1, 1]} : vector<8x96xf32> to vector<8x64xf32>
    %41 = vector.extract_strided_slice %39 {offsets = [0, 0], sizes = [8, 64], strides = [1, 1]} : vector<8x96xf32> to vector<8x64xf32>
    %42 = arith.addf %40, %41 : vector<8x64xf32>
    %43 = arith.negf %42 : vector<8x64xf32>
    %44 = math.exp %43 : vector<8x64xf32>
    %cst_14 = arith.constant 1.000000e+00 : f32
    %45 = vector.broadcast %cst_14 : f32 to vector<8x64xf32>
    %46 = arith.addf %45, %44 : vector<8x64xf32>
    %47 = arith.divf %45, %46 : vector<8x64xf32>
    %48 = vector.extract_strided_slice %47 {offsets = [0, 0], sizes = [8, 32], strides = [1, 1]} : vector<8x64xf32> to vector<8x32xf32>
    %49 = vector.extract_strided_slice %47 {offsets = [0, 32], sizes = [8, 32], strides = [1, 1]} : vector<8x64xf32> to vector<8x32xf32>
    %50 = vector.extract_strided_slice %37 {offsets = [0, 64], sizes = [8, 32], strides = [1, 1]} : vector<8x96xf32> to vector<8x32xf32>
    %51 = vector.extract_strided_slice %39 {offsets = [0, 64], sizes = [8, 32], strides = [1, 1]} : vector<8x96xf32> to vector<8x32xf32>
    %52 = arith.addf %51, %6 : vector<8x32xf32>
    %53 = arith.mulf %48, %52 : vector<8x32xf32>
    %54 = arith.addf %50, %53 : vector<8x32xf32>
    %55 = math.tanh %54 : vector<8x32xf32>
    %cst_15 = arith.constant 1.000000e+00 : f32
    %56 = vector.broadcast %cst_15 : f32 to vector<8x32xf32>
    %57 = arith.subf %56, %49 : vector<8x32xf32>
    %58 = arith.mulf %57, %55 : vector<8x32xf32>
    %59 = arith.mulf %49, %36 : vector<8x32xf32>
    %60 = arith.addf %58, %59 : vector<8x32xf32>
    %61 = vector.extract_strided_slice %11 {offsets = [16, 0], sizes = [8, 96], strides = [1, 1]} : vector<64x96xf32> to vector<8x96xf32>
    %62 = arith.truncf %60 : vector<8x32xf32> to vector<8x32xbf16>
    %cst_16 = arith.constant dense<0.000000e+00> : vector<8x96xf32>
    %63 = tpu.matmul %62, %1, %cst_16 {dimension_numbers = #tpu.dot_dimension_numbers<[1], [0], [0], [1], [0, 0, 1, 1], [], []>} : vector<8x32xbf16>, vector<32x96xbf16>, vector<8x96xf32> -> vector<8x96xf32>
    %64 = vector.extract_strided_slice %61 {offsets = [0, 0], sizes = [8, 64], strides = [1, 1]} : vector<8x96xf32> to vector<8x64xf32>
    %65 = vector.extract_strided_slice %63 {offsets = [0, 0], sizes = [8, 64], strides = [1, 1]} : vector<8x96xf32> to vector<8x64xf32>
    %66 = arith.addf %64, %65 : vector<8x64xf32>
    %67 = arith.negf %66 : vector<8x64xf32>
    %68 = math.exp %67 : vector<8x64xf32>
    %cst_17 = arith.constant 1.000000e+00 : f32
    %69 = vector.broadcast %cst_17 : f32 to vector<8x64xf32>
    %70 = arith.addf %69, %68 : vector<8x64xf32>
    %71 = arith.divf %69, %70 : vector<8x64xf32>
    %72 = vector.extract_strided_slice %71 {offsets = [0, 0], sizes = [8, 32], strides = [1, 1]} : vector<8x64xf32> to vector<8x32xf32>
    %73 = vector.extract_strided_slice %71 {offsets = [0, 32], sizes = [8, 32], strides = [1, 1]} : vector<8x64xf32> to vector<8x32xf32>
    %74 = vector.extract_strided_slice %61 {offsets = [0, 64], sizes = [8, 32], strides = [1, 1]} : vector<8x96xf32> to vector<8x32xf32>
    %75 = vector.extract_strided_slice %63 {offsets = [0, 64], sizes = [8, 32], strides = [1, 1]} : vector<8x96xf32> to vector<8x32xf32>
    %76 = arith.addf %75, %6 : vector<8x32xf32>
    %77 = arith.mulf %72, %76 : vector<8x32xf32>
    %78 = arith.addf %74, %77 : vector<8x32xf32>
    %79 = math.tanh %78 : vector<8x32xf32>
    %cst_18 = arith.constant 1.000000e+00 : f32
    %80 = vector.broadcast %cst_18 : f32 to vector<8x32xf32>
    %81 = arith.subf %80, %73 : vector<8x32xf32>
    %82 = arith.mulf %81, %79 : vector<8x32xf32>
    %83 = arith.mulf %73, %60 : vector<8x32xf32>
    %84 = arith.addf %82, %83 : vector<8x32xf32>
    %85 = vector.extract_strided_slice %11 {offsets = [24, 0], sizes = [8, 96], strides = [1, 1]} : vector<64x96xf32> to vector<8x96xf32>
    %86 = arith.truncf %84 : vector<8x32xf32> to vector<8x32xbf16>
    %cst_19 = arith.constant dense<0.000000e+00> : vector<8x96xf32>
    %87 = tpu.matmul %86, %1, %cst_19 {dimension_numbers = #tpu.dot_dimension_numbers<[1], [0], [0], [1], [0, 0, 1, 1], [], []>} : vector<8x32xbf16>, vector<32x96xbf16>, vector<8x96xf32> -> vector<8x96xf32>
    %88 = vector.extract_strided_slice %85 {offsets = [0, 0], sizes = [8, 64], strides = [1, 1]} : vector<8x96xf32> to vector<8x64xf32>
    %89 = vector.extract_strided_slice %87 {offsets = [0, 0], sizes = [8, 64], strides = [1, 1]} : vector<8x96xf32> to vector<8x64xf32>
    %90 = arith.addf %88, %89 : vector<8x64xf32>
    %91 = arith.negf %90 : vector<8x64xf32>
    %92 = math.exp %91 : vector<8x64xf32>
    %cst_20 = arith.constant 1.000000e+00 : f32
    %93 = vector.broadcast %cst_20 : f32 to vector<8x64xf32>
    %94 = arith.addf %93, %92 : vector<8x64xf32>
    %95 = arith.divf %93, %94 : vector<8x64xf32>
    %96 = vector.extract_strided_slice %95 {offsets = [0, 0], sizes = [8, 32], strides = [1, 1]} : vector<8x64xf32> to vector<8x32xf32>
    %97 = vector.extract_strided_slice %95 {offsets = [0, 32], sizes = [8, 32], strides = [1, 1]} : vector<8x64xf32> to vector<8x32xf32>
    %98 = vector.extract_strided_slice %85 {offsets = [0, 64], sizes = [8, 32], strides = [1, 1]} : vector<8x96xf32> to vector<8x32xf32>
    %99 = vector.extract_strided_slice %87 {offsets = [0, 64], sizes = [8, 32], strides = [1, 1]} : vector<8x96xf32> to vector<8x32xf32>
    %100 = arith.addf %99, %6 : vector<8x32xf32>
    %101 = arith.mulf %96, %100 : vector<8x32xf32>
    %102 = arith.addf %98, %101 : vector<8x32xf32>
    %103 = math.tanh %102 : vector<8x32xf32>
    %cst_21 = arith.constant 1.000000e+00 : f32
    %104 = vector.broadcast %cst_21 : f32 to vector<8x32xf32>
    %105 = arith.subf %104, %97 : vector<8x32xf32>
    %106 = arith.mulf %105, %103 : vector<8x32xf32>
    %107 = arith.mulf %97, %84 : vector<8x32xf32>
    %108 = arith.addf %106, %107 : vector<8x32xf32>
    %109 = vector.extract_strided_slice %11 {offsets = [32, 0], sizes = [8, 96], strides = [1, 1]} : vector<64x96xf32> to vector<8x96xf32>
    %110 = arith.truncf %108 : vector<8x32xf32> to vector<8x32xbf16>
    %cst_22 = arith.constant dense<0.000000e+00> : vector<8x96xf32>
    %111 = tpu.matmul %110, %1, %cst_22 {dimension_numbers = #tpu.dot_dimension_numbers<[1], [0], [0], [1], [0, 0, 1, 1], [], []>} : vector<8x32xbf16>, vector<32x96xbf16>, vector<8x96xf32> -> vector<8x96xf32>
    %112 = vector.extract_strided_slice %109 {offsets = [0, 0], sizes = [8, 64], strides = [1, 1]} : vector<8x96xf32> to vector<8x64xf32>
    %113 = vector.extract_strided_slice %111 {offsets = [0, 0], sizes = [8, 64], strides = [1, 1]} : vector<8x96xf32> to vector<8x64xf32>
    %114 = arith.addf %112, %113 : vector<8x64xf32>
    %115 = arith.negf %114 : vector<8x64xf32>
    %116 = math.exp %115 : vector<8x64xf32>
    %cst_23 = arith.constant 1.000000e+00 : f32
    %117 = vector.broadcast %cst_23 : f32 to vector<8x64xf32>
    %118 = arith.addf %117, %116 : vector<8x64xf32>
    %119 = arith.divf %117, %118 : vector<8x64xf32>
    %120 = vector.extract_strided_slice %119 {offsets = [0, 0], sizes = [8, 32], strides = [1, 1]} : vector<8x64xf32> to vector<8x32xf32>
    %121 = vector.extract_strided_slice %119 {offsets = [0, 32], sizes = [8, 32], strides = [1, 1]} : vector<8x64xf32> to vector<8x32xf32>
    %122 = vector.extract_strided_slice %109 {offsets = [0, 64], sizes = [8, 32], strides = [1, 1]} : vector<8x96xf32> to vector<8x32xf32>
    %123 = vector.extract_strided_slice %111 {offsets = [0, 64], sizes = [8, 32], strides = [1, 1]} : vector<8x96xf32> to vector<8x32xf32>
    %124 = arith.addf %123, %6 : vector<8x32xf32>
    %125 = arith.mulf %120, %124 : vector<8x32xf32>
    %126 = arith.addf %122, %125 : vector<8x32xf32>
    %127 = math.tanh %126 : vector<8x32xf32>
    %cst_24 = arith.constant 1.000000e+00 : f32
    %128 = vector.broadcast %cst_24 : f32 to vector<8x32xf32>
    %129 = arith.subf %128, %121 : vector<8x32xf32>
    %130 = arith.mulf %129, %127 : vector<8x32xf32>
    %131 = arith.mulf %121, %108 : vector<8x32xf32>
    %132 = arith.addf %130, %131 : vector<8x32xf32>
    %133 = vector.extract_strided_slice %11 {offsets = [40, 0], sizes = [8, 96], strides = [1, 1]} : vector<64x96xf32> to vector<8x96xf32>
    %134 = arith.truncf %132 : vector<8x32xf32> to vector<8x32xbf16>
    %cst_25 = arith.constant dense<0.000000e+00> : vector<8x96xf32>
    %135 = tpu.matmul %134, %1, %cst_25 {dimension_numbers = #tpu.dot_dimension_numbers<[1], [0], [0], [1], [0, 0, 1, 1], [], []>} : vector<8x32xbf16>, vector<32x96xbf16>, vector<8x96xf32> -> vector<8x96xf32>
    %136 = vector.extract_strided_slice %133 {offsets = [0, 0], sizes = [8, 64], strides = [1, 1]} : vector<8x96xf32> to vector<8x64xf32>
    %137 = vector.extract_strided_slice %135 {offsets = [0, 0], sizes = [8, 64], strides = [1, 1]} : vector<8x96xf32> to vector<8x64xf32>
    %138 = arith.addf %136, %137 : vector<8x64xf32>
    %139 = arith.negf %138 : vector<8x64xf32>
    %140 = math.exp %139 : vector<8x64xf32>
    %cst_26 = arith.constant 1.000000e+00 : f32
    %141 = vector.broadcast %cst_26 : f32 to vector<8x64xf32>
    %142 = arith.addf %141, %140 : vector<8x64xf32>
    %143 = arith.divf %141, %142 : vector<8x64xf32>
    %144 = vector.extract_strided_slice %143 {offsets = [0, 0], sizes = [8, 32], strides = [1, 1]} : vector<8x64xf32> to vector<8x32xf32>
    %145 = vector.extract_strided_slice %143 {offsets = [0, 32], sizes = [8, 32], strides = [1, 1]} : vector<8x64xf32> to vector<8x32xf32>
    %146 = vector.extract_strided_slice %133 {offsets = [0, 64], sizes = [8, 32], strides = [1, 1]} : vector<8x96xf32> to vector<8x32xf32>
    %147 = vector.extract_strided_slice %135 {offsets = [0, 64], sizes = [8, 32], strides = [1, 1]} : vector<8x96xf32> to vector<8x32xf32>
    %148 = arith.addf %147, %6 : vector<8x32xf32>
    %149 = arith.mulf %144, %148 : vector<8x32xf32>
    %150 = arith.addf %146, %149 : vector<8x32xf32>
    %151 = math.tanh %150 : vector<8x32xf32>
    %cst_27 = arith.constant 1.000000e+00 : f32
    %152 = vector.broadcast %cst_27 : f32 to vector<8x32xf32>
    %153 = arith.subf %152, %145 : vector<8x32xf32>
    %154 = arith.mulf %153, %151 : vector<8x32xf32>
    %155 = arith.mulf %145, %132 : vector<8x32xf32>
    %156 = arith.addf %154, %155 : vector<8x32xf32>
    %157 = vector.extract_strided_slice %11 {offsets = [48, 0], sizes = [8, 96], strides = [1, 1]} : vector<64x96xf32> to vector<8x96xf32>
    %158 = arith.truncf %156 : vector<8x32xf32> to vector<8x32xbf16>
    %cst_28 = arith.constant dense<0.000000e+00> : vector<8x96xf32>
    %159 = tpu.matmul %158, %1, %cst_28 {dimension_numbers = #tpu.dot_dimension_numbers<[1], [0], [0], [1], [0, 0, 1, 1], [], []>} : vector<8x32xbf16>, vector<32x96xbf16>, vector<8x96xf32> -> vector<8x96xf32>
    %160 = vector.extract_strided_slice %157 {offsets = [0, 0], sizes = [8, 64], strides = [1, 1]} : vector<8x96xf32> to vector<8x64xf32>
    %161 = vector.extract_strided_slice %159 {offsets = [0, 0], sizes = [8, 64], strides = [1, 1]} : vector<8x96xf32> to vector<8x64xf32>
    %162 = arith.addf %160, %161 : vector<8x64xf32>
    %163 = arith.negf %162 : vector<8x64xf32>
    %164 = math.exp %163 : vector<8x64xf32>
    %cst_29 = arith.constant 1.000000e+00 : f32
    %165 = vector.broadcast %cst_29 : f32 to vector<8x64xf32>
    %166 = arith.addf %165, %164 : vector<8x64xf32>
    %167 = arith.divf %165, %166 : vector<8x64xf32>
    %168 = vector.extract_strided_slice %167 {offsets = [0, 0], sizes = [8, 32], strides = [1, 1]} : vector<8x64xf32> to vector<8x32xf32>
    %169 = vector.extract_strided_slice %167 {offsets = [0, 32], sizes = [8, 32], strides = [1, 1]} : vector<8x64xf32> to vector<8x32xf32>
    %170 = vector.extract_strided_slice %157 {offsets = [0, 64], sizes = [8, 32], strides = [1, 1]} : vector<8x96xf32> to vector<8x32xf32>
    %171 = vector.extract_strided_slice %159 {offsets = [0, 64], sizes = [8, 32], strides = [1, 1]} : vector<8x96xf32> to vector<8x32xf32>
    %172 = arith.addf %171, %6 : vector<8x32xf32>
    %173 = arith.mulf %168, %172 : vector<8x32xf32>
    %174 = arith.addf %170, %173 : vector<8x32xf32>
    %175 = math.tanh %174 : vector<8x32xf32>
    %cst_30 = arith.constant 1.000000e+00 : f32
    %176 = vector.broadcast %cst_30 : f32 to vector<8x32xf32>
    %177 = arith.subf %176, %169 : vector<8x32xf32>
    %178 = arith.mulf %177, %175 : vector<8x32xf32>
    %179 = arith.mulf %169, %156 : vector<8x32xf32>
    %180 = arith.addf %178, %179 : vector<8x32xf32>
    %181 = vector.extract_strided_slice %11 {offsets = [56, 0], sizes = [8, 96], strides = [1, 1]} : vector<64x96xf32> to vector<8x96xf32>
    %182 = arith.truncf %180 : vector<8x32xf32> to vector<8x32xbf16>
    %cst_31 = arith.constant dense<0.000000e+00> : vector<8x96xf32>
    %183 = tpu.matmul %182, %1, %cst_31 {dimension_numbers = #tpu.dot_dimension_numbers<[1], [0], [0], [1], [0, 0, 1, 1], [], []>} : vector<8x32xbf16>, vector<32x96xbf16>, vector<8x96xf32> -> vector<8x96xf32>
    %184 = vector.extract_strided_slice %181 {offsets = [0, 0], sizes = [8, 64], strides = [1, 1]} : vector<8x96xf32> to vector<8x64xf32>
    %185 = vector.extract_strided_slice %183 {offsets = [0, 0], sizes = [8, 64], strides = [1, 1]} : vector<8x96xf32> to vector<8x64xf32>
    %186 = arith.addf %184, %185 : vector<8x64xf32>
    %187 = arith.negf %186 : vector<8x64xf32>
    %188 = math.exp %187 : vector<8x64xf32>
    %cst_32 = arith.constant 1.000000e+00 : f32
    %189 = vector.broadcast %cst_32 : f32 to vector<8x64xf32>
    %190 = arith.addf %189, %188 : vector<8x64xf32>
    %191 = arith.divf %189, %190 : vector<8x64xf32>
    %192 = vector.extract_strided_slice %191 {offsets = [0, 0], sizes = [8, 32], strides = [1, 1]} : vector<8x64xf32> to vector<8x32xf32>
    %193 = vector.extract_strided_slice %191 {offsets = [0, 32], sizes = [8, 32], strides = [1, 1]} : vector<8x64xf32> to vector<8x32xf32>
    %194 = vector.extract_strided_slice %181 {offsets = [0, 64], sizes = [8, 32], strides = [1, 1]} : vector<8x96xf32> to vector<8x32xf32>
    %195 = vector.extract_strided_slice %183 {offsets = [0, 64], sizes = [8, 32], strides = [1, 1]} : vector<8x96xf32> to vector<8x32xf32>
    %196 = arith.addf %195, %6 : vector<8x32xf32>
    %197 = arith.mulf %192, %196 : vector<8x32xf32>
    %198 = arith.addf %194, %197 : vector<8x32xf32>
    %199 = math.tanh %198 : vector<8x32xf32>
    %cst_33 = arith.constant 1.000000e+00 : f32
    %200 = vector.broadcast %cst_33 : f32 to vector<8x32xf32>
    %201 = arith.subf %200, %193 : vector<8x32xf32>
    %202 = arith.mulf %201, %199 : vector<8x32xf32>
    %203 = arith.mulf %193, %180 : vector<8x32xf32>
    %204 = arith.addf %202, %203 : vector<8x32xf32>
    %205 = arith.truncf %204 : vector<8x32xf32> to vector<8x32xbf16>
    %cst_34 = arith.constant dense<0.000000e+00> : vector<8x1xf32>
    %206 = tpu.matmul %205, %2, %cst_34 {dimension_numbers = #tpu.dot_dimension_numbers<[1], [0], [0], [1], [0, 0, 1, 1], [], []>} : vector<8x32xbf16>, vector<32x1xbf16>, vector<8x1xf32> -> vector<8x1xf32>
    %207 = vector.broadcast %7 : vector<1x1xf32> to vector<8x1xf32>
    %208 = arith.addf %206, %207 : vector<8x1xf32>
    %c0_35 = arith.constant 0 : index
    %c0_36 = arith.constant 0 : index
    %209 = vector.load %arg3[%c0_35, %c0_36] : memref<8x1xf32, #tpu.memory_space<vmem>>, vector<8x1xf32>
    tpu.vector_store %arg3[%c0_35, %c0_36], %208 {strides = array<i32>} : memref<8x1xf32, #tpu.memory_space<vmem>>, vector<8x1xf32>,
    return
  }
}

</mosaic_0001>

<bundles_post_ra>
// kernel: tpu_custom_call.1
= control target key start
LH: loop header
LB: loop body
LE: loop exit
PB: predicated region body
PF: predicated region fallthrough
CT: control target
= control target key end

     0   :  { %v1042_v0 = vmov 0.0   ;;  %vm1043_vm0 = vmmov 0   ;;  %vm78_vm1 = vcmask 261120   ;;  %s1044_s26 = smov 64   ;;  %v1045_v8 = vmov 0   ;;  %s1046_s29 = smov 96   ;;  %s1248_s1 = inlined_call_operand.vmem [shape: bf16[96,96], index: 1, kind: input, shape index: {}]   ;;  %s1249_s0 = inlined_call_operand.vmem [shape: bf16[64,32], index: 0, kind: input, shape index: {}]   ;;  %s1250_s2 = inlined_call_operand.vmem [shape: f32[3,96], index: 2, kind: input, shape index: {}]   ;;  %s1251_s3 = inlined_call_operand.vmem [shape: f32[8,1], index: 3, kind: output, shape index: {}]  }
   0x1   :  { %907 = vmatprep.subr.bf16.mxu1 %v1042_v0  ;;  %v984_v1 = vld [vmem:[%s1248_s1] sm:$0xff]   ;;  %911 = vmatprep.mubr.msk.bf16.mxu1 %vm1043_vm0, %v1042_v0  ;;  %v1076_v2 = vld [vmem:[%s1248_s1 + $0x10] sm:$0xff]   ;;  %v986_v3 = vld [vmem:[%s1248_s1 + $0x8] sm:$0xff]   ;;  %vm823_vm2 = vcmask 7168  }
   0x2   :  { %895 = vmatprep.subr.bf16.mxu0 %v984_v1  ;;  %908 = vmatpush3.bf16.msra.mxu1 %v1076_v2  ;;  %v1085_v4 = vld [vmem:[%s1248_s1 + $0x18] sm:$0xff]   ;;  %v988_v5 = vld [vmem:[%s1249_s0] sm:$0xff]   ;;  %v989_v6 = vld [vmem:[%s1249_s0 + $0x8] sm:$0xff]  }
   0x3   :  { %896 = vmatpush3.bf16.msra.mxu0 %v984_v1  ;;  %909 = vmatprep.subr.bf16.mxu1 %v1042_v0  ;;  %v829_v7 = vld [vmem:[%s1250_s2 + $0x1] ss:$0 sm:$0xff]  ;;  %v1124_v19 = vld [vmem:[%s1250_s2] ss:$0 sm:$0xff]  ;;  %v990_v53 = vld [vmem:[%s1249_s0 + $0x10] sm:$0xff]  }
   0x4   :  { %897 = vmatprep.subr.bf16.mxu0 %v986_v3  ;;  %899 = vmatprep.mubr.msk.bf16.mxu0 %vm78_vm1, %v988_v5  ;;  %v991_v54 = vld [vmem:[%s1249_s0 + $0x18] sm:$0xff]  }
   0x5   :  { %219 = vrot.lane.b32.xlu0 %v829_v7, %s1044_s26 }
   0x6   :  { %910 = vmatpush3.bf16.msra.mxu1 %v1085_v4 }
   0x7   :  { %898 = vmatpush3.bf16.msra.mxu0 %v986_v3  ;;  %915 = vmatprep.subr.bf16.mxu1 %v1042_v0 }
   0x8   :  { %923 = vmatprep.subr.bf16.mxu0 %v1042_v0 }
   0x9   :  { %912 = vmatmul.mubr.bf16.vlgmr.msra.gmra.mrb[0].mxu1 %v1045_v8 }
   0xa   :  { %900 = vmatmul.mubr.msk.bf16.vlgmr.msra.gmra.mrb[0].mxu0 %vm78_vm1, %v989_v6  ;;  %916 = vmatpush3.bf16.msra.mxu1 %v1076_v2 }
   0xb   :  { %919 = vmatprep.mubr.msk.bf16.mxu1 %vm1043_vm0, %v1042_v0  ;;  %917 = vmatprep.subr.bf16.mxu1 %v1042_v0 }
   0xc   :  { %924 = vmatpush3.bf16.msra.mxu0 %v1076_v2  ;;  %903 = vmatprep.mubr.msk.bf16.mxu0 %vm78_vm1, %v990_v53 }
   0xd   :  { %925 = vmatprep.subr.bf16.mxu0 %v1042_v0 }
   0xe   :  { %918 = vmatpush3.bf16.msra.mxu1 %v1085_v4 }
   0xf   :  { %931 = vmatprep.subr.bf16.mxu1 %v1042_v0 }
  0x10   :  { %926 = vmatpush3.bf16.msra.mxu0 %v1085_v4 }
  0x11   :  { %939 = vmatprep.subr.bf16.mxu0 %v1042_v0 }
  0x12   :  { %904 = vmatmul.mubr.msk.bf16.gmra.mrb[4].mxu0 %vm78_vm1, %v991_v54 }
  0x13   :  { %927 = vmatprep.mubr.msk.bf16.mxu0 %vm1043_vm0, %v1042_v0 }
  0x77   :  { %v1113_v9 = vpop.permute.xlu0 %219 }
  0xdc   :  { %v205_v10 = vpop.f32.mrb[0].mxu1 }
  0xdd   :  { %v1115_v11 = vpop.f32.mrb[0].mxu0  ;;  %v222_v12 = vadd.f32 %v1113_v9, %v205_v10  ;;  %v913_v13 = vpop.f32.mrb[1].mxu1 }
  0xde   :  { %v125_v14 = vpop.f32.mrb[1].mxu0  ;;  %v208_v15 = vpop.f32.mrb[2].mxu1  ;;  %v134_v13 = vadd.f32 %v1115_v11, %v1124_v19 }
  0xdf   :  { %v1118_v16 = vpop.f32.mrb[2].mxu0  ;;  %224 = vrot.lane.b32.xlu0 %v222_v12, %s1044_s26  ;;  %v914_v17 = vpop.f32.mrb[3].mxu1  ;;  %v126_v20 = vadd.f32 %v1124_v19, %v125_v14 }
  0xe0   :  { %v128_v18 = vpop.f32.mrb[3].mxu0 }
  0xe1   :  { %v211_v21 = vadd.f32 %v205_v10, %v126_v20  ;;  %v129_v43 = vadd.f32 %v1124_v19, %v128_v18 }
  0xe3   :  { %v843_v22 = vmul.f32 -1.442695, %v211_v21 }
  0xe5   :  { %994 = vpow2.f32 %v843_v22  ;;  %v1153_v62 = vpop.f32.mrb[4].mxu0 }
  0xe6   :  { %v1155_v63 = vpop.f32.mrb[5].mxu0 }
  0xe7   :  { %v1157_v1 = vpop.f32.mrb[6].mxu0 }
  0xe8   :  { %v1159_v3 = vpop.f32.mrb[7].mxu0 }
  0xef   :  { %v995_v23 = vpop.eup %994 }
  0xf0   :  { %v215_v24 = vadd.f32 1.0, %v995_v23 }
  0xf2   :  { %996 = vrcp.f32 %v215_v24 }
  0xfc   :  { %v997_v25 = vpop.eup %996 }
  0xfd   :  { %v234_v31 = vsub.f32 1.0, %v997_v25  ;;  %v240_v33 = vmul.f32 0.0, %v997_v25 }
 0x151   :  { %v225_v26 = vpop.permute.xlu0 %224 }
 0x152   :  { %v227_v27 = vmul.f32 %v997_v25, %v225_v26 }
 0x154   :  { %229 = vrot.lane.b32.xlu1 %v227_v27, %s1044_s26 }
 0x1c6   :  { %v230_v28 = vpop.permute.xlu1 %229 }
 0x1c7   :  { %v232_v29 = vadd.f32 %v230_v28, %v126_v20 }
 0x1c9   :  { %998 = vtanh.f32 %v232_v29 }
 0x1d3   :  { %v999_v30 = vpop.eup %998 }
 0x1d4   :  { %236 = vrot.lane.b32.xlu1 %v999_v30, %s1046_s29 }
 0x246   :  { %v237_v32 = vpop.permute.xlu1 %236 }
 0x247   :  { %v239_v34 = vmul.f32 %v237_v32, %v234_v31 }
 0x249   :  { %v241_v35 = vadd.f32 %v240_v33, %v239_v34 }
 0x24b   :  { %v242_v36 = vpack.c.bf16 %v241_v35, %v241_v35 }
 0x24d   :  { %244 = vrot.lane.b32.xlu0 %v242_v36, %s1046_s29 }
 0x2bf   :  { %v245_v37 = vpop.permute.xlu0 %244 }
 0x2c0   :  { %920 = vmatmul.mubr.msk.bf16.vlgmr.msra.gmra.mrb[4].mxu1 %vm78_vm1, %v245_v37  ;;  %v137_v37 = vadd.f32 %v1118_v16, %v1124_v19 }
 0x2c1   :  { %932 = vmatpush3.bf16.msra.mxu1 %v1076_v2  ;;  %935 = vmatprep.mubr.msk.bf16.mxu1 %vm1043_vm0, %v1042_v0 }
 0x2c2   :  { %933 = vmatprep.subr.bf16.mxu1 %v1042_v0 }
 0x2c5   :  { %934 = vmatpush3.bf16.msra.mxu1 %v1085_v4 }
 0x2c6   :  { %947 = vmatprep.subr.bf16.mxu1 %v1042_v0 }
 0x393   :  { %v283_v38 = vpop.f32.mrb[4].mxu1 }
 0x394   :  { %v296_v39 = vadd.f32 %v283_v38, %v1113_v9  ;;  %v921_v40 = vpop.f32.mrb[5].mxu1  ;;  %v289_v44 = vadd.f32 %v283_v38, %v129_v43 }
 0x395   :  { %v286_v41 = vpop.f32.mrb[6].mxu1 }
 0x396   :  { %298 = vrot.lane.b32.xlu1 %v296_v39, %s1044_s26  ;;  %v922_v42 = vpop.f32.mrb[7].mxu1  ;;  %v845_v45 = vmul.f32 -1.442695, %v289_v44 }
 0x398   :  { %1000 = vpow2.f32 %v845_v45 }
 0x3a2   :  { %v1001_v46 = vpop.eup %1000 }
 0x3a3   :  { %v293_v47 = vadd.f32 1.0, %v1001_v46 }
 0x3a5   :  { %1002 = vrcp.f32 %v293_v47 }
 0x3af   :  { %v1003_v48 = vpop.eup %1002 }
 0x3b0   :  { %v308_v56 = vsub.f32 1.0, %v1003_v48  ;;  %v314_v58 = vmul.f32 %v1003_v48, %v241_v35 }
 0x408   :  { %v299_v49 = vpop.permute.xlu1 %298 }
 0x409   :  { %v301_v50 = vmul.f32 %v1003_v48, %v299_v49 }
 0x40b   :  { %303 = vrot.lane.b32.xlu0 %v301_v50, %s1044_s26 }
 0x47d   :  { %v304_v51 = vpop.permute.xlu0 %303 }
 0x47e   :  { %v306_v52 = vadd.f32 %v304_v51, %v129_v43 }
 0x480   :  { %1004 = vtanh.f32 %v306_v52 }
 0x48a   :  { %v1005_v55 = vpop.eup %1004 }
 0x48b   :  { %310 = vrot.lane.b32.xlu1 %v1005_v55, %s1046_s29 }
 0x4fd   :  { %v311_v57 = vpop.permute.xlu1 %310 }
 0x4fe   :  { %v313_v59 = vmul.f32 %v311_v57, %v308_v56 }
 0x500   :  { %v315_v60 = vadd.f32 %v314_v58, %v313_v59  ;;  %v142_v59 = vadd.f32 %v1124_v19, %v1155_v63 }
 0x502   :  { %v316_v61 = vpack.c.bf16 %v315_v60, %v315_v60 }
 0x504   :  { %318 = vrot.lane.b32.xlu0 %v316_v61, %s1046_s29 }
 0x576   :  { %v319_v5 = vpop.permute.xlu0 %318 }
 0x577   :  { %928 = vmatmul.mubr.msk.bf16.vlgmr.msra.gmra.mrb[8].mxu0 %vm78_vm1, %v319_v5 }
 0x578   :  { %940 = vmatpush3.bf16.msra.mxu0 %v1076_v2  ;;  %943 = vmatprep.mubr.msk.bf16.mxu0 %vm1043_vm0, %v1042_v0 }
 0x579   :  { %941 = vmatprep.subr.bf16.mxu0 %v1042_v0 }
 0x57c   :  { %942 = vmatpush3.bf16.msra.mxu0 %v1085_v4 }
 0x57d   :  { %955 = vmatprep.subr.bf16.mxu0 %v1042_v0 }
 0x64a   :  { %v357_v6 = vpop.f32.mrb[8].mxu0 }
 0x64b   :  { %v370_v7 = vadd.f32 %v357_v6, %v1113_v9  ;;  %v929_v8 = vpop.f32.mrb[9].mxu0  ;;  %v363_v14 = vadd.f32 %v357_v6, %v134_v13 }
 0x64c   :  { %v360_v10 = vpop.f32.mrb[10].mxu0 }
 0x64d   :  { %372 = vrot.lane.b32.xlu1 %v370_v7, %s1044_s26  ;;  %v930_v12 = vpop.f32.mrb[11].mxu0  ;;  %v847_v15 = vmul.f32 -1.442695, %v363_v14 }
 0x64f   :  { %1006 = vpow2.f32 %v847_v15 }
 0x659   :  { %v1007_v17 = vpop.eup %1006 }
 0x65a   :  { %v367_v18 = vadd.f32 1.0, %v1007_v17 }
 0x65c   :  { %1008 = vrcp.f32 %v367_v18 }
 0x666   :  { %v1009_v20 = vpop.eup %1008 }
 0x667   :  { %v382_v26 = vsub.f32 1.0, %v1009_v20  ;;  %v388_v11 = vmul.f32 %v1009_v20, %v315_v60 }
 0x6bf   :  { %v373_v21 = vpop.permute.xlu1 %372 }
 0x6c0   :  { %v375_v22 = vmul.f32 %v1009_v20, %v373_v21 }
 0x6c2   :  { %377 = vrot.lane.b32.xlu0 %v375_v22, %s1044_s26 }
 0x734   :  { %v378_v23 = vpop.permute.xlu0 %377 }
 0x735   :  { %v380_v24 = vadd.f32 %v378_v23, %v134_v13 }
 0x737   :  { %1010 = vtanh.f32 %v380_v24 }
 0x741   :  { %v1011_v25 = vpop.eup %1010 }
 0x742   :  { %384 = vrot.lane.b32.xlu1 %v1011_v25, %s1046_s29 }
 0x7b4   :  { %v385_v27 = vpop.permute.xlu1 %384 }
 0x7b5   :  { %v387_v28 = vmul.f32 %v385_v27, %v382_v26 }
 0x7b7   :  { %v389_v29 = vadd.f32 %v388_v11, %v387_v28  ;;  %v145_v11 = vadd.f32 %v1124_v19, %v1159_v3 }
 0x7b9   :  { %v390_v30 = vpack.c.bf16 %v389_v29, %v389_v29 }
 0x7bb   :  { %392 = vrot.lane.b32.xlu0 %v390_v30, %s1046_s29 }
 0x82d   :  { %v393_v31 = vpop.permute.xlu0 %392 }
 0x82e   :  { %936 = vmatmul.mubr.msk.bf16.vlgmr.msra.gmra.mrb[8].mxu1 %vm78_vm1, %v393_v31 }
 0x82f   :  { %948 = vmatpush3.bf16.msra.mxu1 %v1076_v2  ;;  %951 = vmatprep.mubr.msk.bf16.mxu1 %vm1043_vm0, %v1042_v0 }
 0x830   :  { %949 = vmatprep.subr.bf16.mxu1 %v1042_v0 }
 0x833   :  { %950 = vmatpush3.bf16.msra.mxu1 %v1085_v4 }
 0x834   :  { %963 = vmatprep.subr.bf16.mxu1 %v1042_v0 }
 0x901   :  { %v431_v32 = vpop.f32.mrb[8].mxu1 }
 0x902   :  { %v444_v33 = vadd.f32 %v431_v32, %v1113_v9  ;;  %v937_v34 = vpop.f32.mrb[9].mxu1  ;;  %v437_v38 = vadd.f32 %v431_v32, %v137_v37 }
 0x903   :  { %v434_v35 = vpop.f32.mrb[10].mxu1 }
 0x904   :  { %446 = vrot.lane.b32.xlu1 %v444_v33, %s1044_s26  ;;  %v938_v36 = vpop.f32.mrb[11].mxu1  ;;  %v849_v39 = vmul.f32 -1.442695, %v437_v38 }
 0x906   :  { %1012 = vpow2.f32 %v849_v39 }
 0x910   :  { %v1013_v40 = vpop.eup %1012 }
 0x911   :  { %v441_v41 = vadd.f32 1.0, %v1013_v40 }
 0x913   :  { %1014 = vrcp.f32 %v441_v41 }
 0x91d   :  { %v1015_v42 = vpop.eup %1014 }
 0x91e   :  { %v456_v48 = vsub.f32 1.0, %v1015_v42  ;;  %v462_v16 = vmul.f32 %v1015_v42, %v389_v29 }
 0x976   :  { %v447_v43 = vpop.permute.xlu1 %446 }
 0x977   :  { %v449_v44 = vmul.f32 %v1015_v42, %v447_v43 }
 0x979   :  { %451 = vrot.lane.b32.xlu0 %v449_v44, %s1044_s26 }
 0x9eb   :  { %v452_v45 = vpop.permute.xlu0 %451 }
 0x9ec   :  { %v454_v46 = vadd.f32 %v452_v45, %v137_v37 }
 0x9ee   :  { %1016 = vtanh.f32 %v454_v46 }
 0x9f8   :  { %v1017_v47 = vpop.eup %1016 }
 0x9f9   :  { %458 = vrot.lane.b32.xlu1 %v1017_v47, %s1046_s29  ;;  %v150_v47 = vadd.f32 %v1153_v62, %v1124_v19 }
 0xa6b   :  { %v459_v49 = vpop.permute.xlu1 %458 }
 0xa6c   :  { %v461_v50 = vmul.f32 %v459_v49, %v456_v48 }
 0xa6e   :  { %v463_v51 = vadd.f32 %v462_v16, %v461_v50 }
 0xa70   :  { %v464_v52 = vpack.c.bf16 %v463_v51, %v463_v51 }
 0xa72   :  { %466 = vrot.lane.b32.xlu0 %v464_v52, %s1046_s29 }
 0xae4   :  { %v467_v53 = vpop.permute.xlu0 %466 }
 0xae5   :  { %944 = vmatmul.mubr.msk.bf16.vlgmr.msra.gmra.mrb[12].mxu0 %vm78_vm1, %v467_v53 }
 0xae6   :  { %956 = vmatpush3.bf16.msra.mxu0 %v1076_v2  ;;  %959 = vmatprep.mubr.msk.bf16.mxu0 %vm1043_vm0, %v1042_v0 }
 0xae7   :  { %957 = vmatprep.subr.bf16.mxu0 %v1042_v0 }
 0xaea   :  { %958 = vmatpush3.bf16.msra.mxu0 %v1085_v4 }
 0xaeb   :  { %971 = vmatprep.subr.bf16.mxu0 %v1042_v0 }
 0xbb8   :  { %v505_v54 = vpop.f32.mrb[12].mxu0 }
 0xbb9   :  { %v518_v55 = vadd.f32 %v505_v54, %v1113_v9  ;;  %v945_v56 = vpop.f32.mrb[13].mxu0  ;;  %v511_v60 = vadd.f32 %v505_v54, %v142_v59 }
 0xbba   :  { %v508_v57 = vpop.f32.mrb[14].mxu0 }
 0xbbb   :  { %520 = vrot.lane.b32.xlu1 %v518_v55, %s1044_s26  ;;  %v946_v58 = vpop.f32.mrb[15].mxu0  ;;  %v851_v61 = vmul.f32 -1.442695, %v511_v60 }
 0xbbd   :  { %1018 = vpow2.f32 %v851_v61 }
 0xbc7   :  { %v1019_v5 = vpop.eup %1018 }
 0xbc8   :  { %v515_v6 = vadd.f32 1.0, %v1019_v5 }
 0xbca   :  { %1020 = vrcp.f32 %v515_v6 }
 0xbd4   :  { %v1021_v7 = vpop.eup %1020 }
 0xbd5   :  { %v530_v15 = vsub.f32 1.0, %v1021_v7  ;;  %v536_v63 = vmul.f32 %v1021_v7, %v463_v51 }
 0xc2d   :  { %v521_v8 = vpop.permute.xlu1 %520 }
 0xc2e   :  { %v523_v10 = vmul.f32 %v1021_v7, %v521_v8 }
 0xc30   :  { %525 = vrot.lane.b32.xlu0 %v523_v10, %s1044_s26 }
 0xca2   :  { %v526_v12 = vpop.permute.xlu0 %525 }
 0xca3   :  { %v528_v13 = vadd.f32 %v526_v12, %v142_v59 }
 0xca5   :  { %1022 = vtanh.f32 %v528_v13  ;;  %v153_v13 = vadd.f32 %v1157_v1, %v1124_v19  ;;  %v993_v19 = vld [vmem:[%s1248_s1 + $0x28] sm:$0xff]  }
 0xcaf   :  { %v1023_v14 = vpop.eup %1022 }
 0xcb0   :  { %532 = vrot.lane.b32.xlu1 %v1023_v14, %s1046_s29 }
 0xd22   :  { %v533_v17 = vpop.permute.xlu1 %532 }
 0xd23   :  { %v535_v18 = vmul.f32 %v533_v17, %v530_v15 }
 0xd25   :  { %v537_v20 = vadd.f32 %v536_v63, %v535_v18 }
 0xd27   :  { %v538_v21 = vpack.c.bf16 %v537_v20, %v537_v20 }
 0xd29   :  { %540 = vrot.lane.b32.xlu0 %v538_v21, %s1046_s29 }
 0xd9b   :  { %v541_v22 = vpop.permute.xlu0 %540 }
 0xd9c   :  { %952 = vmatmul.mubr.msk.bf16.vlgmr.msra.gmra.mrb[12].mxu1 %vm78_vm1, %v541_v22 }
 0xd9d   :  { %964 = vmatpush3.bf16.msra.mxu1 %v1076_v2  ;;  %967 = vmatprep.mubr.msk.bf16.mxu1 %vm1043_vm0, %v1042_v0 }
 0xd9e   :  { %965 = vmatprep.subr.bf16.mxu1 %v1042_v0 }
 0xda1   :  { %966 = vmatpush3.bf16.msra.mxu1 %v1085_v4 }
 0xe6f   :  { %v579_v23 = vpop.f32.mrb[12].mxu1 }
 0xe70   :  { %v592_v24 = vadd.f32 %v579_v23, %v1113_v9  ;;  %v953_v25 = vpop.f32.mrb[13].mxu1  ;;  %v585_v28 = vadd.f32 %v579_v23, %v145_v11  ;;  %v992_v23 = vld [vmem:[%s1248_s1 + $0x20] sm:$0xff]  }
 0xe71   :  { %v582_v26 = vpop.f32.mrb[14].mxu1 }
 0xe72   :  { %594 = vrot.lane.b32.xlu1 %v592_v24, %s1044_s26  ;;  %v954_v27 = vpop.f32.mrb[15].mxu1  ;;  %v853_v2 = vmul.f32 -1.442695, %v585_v28 }
 0xe74   :  { %1024 = vpow2.f32 %v853_v2 }
 0xe7e   :  { %v1025_v29 = vpop.eup %1024 }
 0xe7f   :  { %v589_v30 = vadd.f32 1.0, %v1025_v29  ;;  %v858_v29 = vld [vmem:[%s1250_s2 + $0x2] ss:$0 sm:$0xff] }
 0xe81   :  { %1026 = vrcp.f32 %v589_v30 }
 0xe8b   :  { %v1027_v31 = vpop.eup %1026 }
 0xe8c   :  { %v604_v36 = vsub.f32 1.0, %v1027_v31  ;;  %v610_v3 = vmul.f32 %v1027_v31, %v537_v20 }
 0xee4   :  { %v595_v32 = vpop.permute.xlu1 %594 }
 0xee5   :  { %v597_v4 = vmul.f32 %v1027_v31, %v595_v32 }
 0xee7   :  { %599 = vrot.lane.b32.xlu0 %v597_v4, %s1044_s26 }
 0xf59   :  { %v600_v33 = vpop.permute.xlu0 %599 }
 0xf5a   :  { %v602_v34 = vadd.f32 %v600_v33, %v145_v11 }
 0xf5c   :  { %1028 = vtanh.f32 %v602_v34 }
 0xf66   :  { %v1029_v35 = vpop.eup %1028 }
 0xf67   :  { %606 = vrot.lane.b32.xlu1 %v1029_v35, %s1046_s29 }
 0xfd9   :  { %v607_v37 = vpop.permute.xlu1 %606 }
 0xfda   :  { %v609_v38 = vmul.f32 %v607_v37, %v604_v36 }
 0xfdc   :  { %v611_v39 = vadd.f32 %v610_v3, %v609_v38 }
 0xfde   :  { %v612_v40 = vpack.c.bf16 %v611_v39, %v611_v39 }
 0xfe0   :  { %614 = vrot.lane.b32.xlu0 %v612_v40, %s1046_s29 }
0x1052   :  { %v615_v41 = vpop.permute.xlu0 %614 }
0x1053   :  { %960 = vmatmul.mubr.msk.bf16.vlgmr.msra.gmra.mrb[16].mxu0 %vm78_vm1, %v615_v41 }
0x1054   :  { %975 = vmatprep.mubr.msk.bf16.mxu0 %vm1043_vm0, %v1042_v0  ;;  %972 = vmatpush3.bf16.msra.mxu0 %v992_v23 }
0x1055   :  { %973 = vmatprep.subr.bf16.mxu0 %v1042_v0 }
0x1058   :  { %974 = vmatpush3.bf16.msra.mxu0 %v993_v19 }
0x1126   :  { %v653_v42 = vpop.f32.mrb[16].mxu0 }
0x1127   :  { %v666_v43 = vadd.f32 %v653_v42, %v1113_v9  ;;  %v961_v44 = vpop.f32.mrb[17].mxu0  ;;  %v659_v48 = vadd.f32 %v653_v42, %v150_v47 }
0x1128   :  { %v656_v45 = vpop.f32.mrb[18].mxu0 }
0x1129   :  { %668 = vrot.lane.b32.xlu1 %v666_v43, %s1044_s26  ;;  %v962_v46 = vpop.f32.mrb[19].mxu0  ;;  %v855_v49 = vmul.f32 -1.442695, %v659_v48 }
0x112b   :  { %1030 = vpow2.f32 %v855_v49 }
0x1135   :  { %v1031_v16 = vpop.eup %1030 }
0x1136   :  { %v663_v50 = vadd.f32 1.0, %v1031_v16 }
0x1138   :  { %1032 = vrcp.f32 %v663_v50 }
0x1142   :  { %v1033_v51 = vpop.eup %1032 }
0x1143   :  { %v678_v57 = vsub.f32 1.0, %v1033_v51  ;;  %v684_v62 = vmul.f32 %v1033_v51, %v611_v39 }
0x119b   :  { %v669_v52 = vpop.permute.xlu1 %668 }
0x119c   :  { %v671_v53 = vmul.f32 %v1033_v51, %v669_v52 }
0x119e   :  { %673 = vrot.lane.b32.xlu0 %v671_v53, %s1044_s26 }
0x1210   :  { %v674_v54 = vpop.permute.xlu0 %673 }
0x1211   :  { %v676_v55 = vadd.f32 %v674_v54, %v150_v47 }
0x1213   :  { %1034 = vtanh.f32 %v676_v55 }
0x121d   :  { %v1035_v56 = vpop.eup %1034 }
0x121e   :  { %680 = vrot.lane.b32.xlu1 %v1035_v56, %s1046_s29 }
0x1290   :  { %v681_v58 = vpop.permute.xlu1 %680 }
0x1291   :  { %v683_v59 = vmul.f32 %v681_v58, %v678_v57 }
0x1293   :  { %v685_v60 = vadd.f32 %v684_v62, %v683_v59 }
0x1295   :  { %v686_v61 = vpack.c.bf16 %v685_v60, %v685_v60 }
0x1297   :  { %688 = vrot.lane.b32.xlu0 %v686_v61, %s1046_s29 }
0x1309   :  { %v689_v5 = vpop.permute.xlu0 %688 }
0x130a   :  { %968 = vmatmul.mubr.msk.bf16.vlgmr.msra.gmra.mrb[16].mxu1 %vm78_vm1, %v689_v5 }
0x13dd   :  { %v727_v6 = vpop.f32.mrb[16].mxu1 }
0x13de   :  { %v740_v7 = vadd.f32 %v727_v6, %v1113_v9  ;;  %v969_v8 = vpop.f32.mrb[17].mxu1  ;;  %v733_v14 = vadd.f32 %v727_v6, %v153_v13 }
0x13df   :  { %v730_v10 = vpop.f32.mrb[18].mxu1 }
0x13e0   :  { %742 = vrot.lane.b32.xlu1 %v740_v7, %s1044_s26  ;;  %v970_v12 = vpop.f32.mrb[19].mxu1  ;;  %v857_v15 = vmul.f32 -1.442695, %v733_v14 }
0x13e2   :  { %1036 = vpow2.f32 %v857_v15 }
0x13ec   :  { %v1037_v17 = vpop.eup %1036 }
0x13ed   :  { %v737_v63 = vadd.f32 1.0, %v1037_v17 }
0x13ef   :  { %1038 = vrcp.f32 %v737_v63 }
0x13f9   :  { %v1039_v18 = vpop.eup %1038 }
0x13fa   :  { %v752_v24 = vsub.f32 1.0, %v1039_v18  ;;  %v758_v26 = vmul.f32 %v1039_v18, %v685_v60 }
0x1452   :  { %v743_v20 = vpop.permute.xlu1 %742 }
0x1453   :  { %v745_v21 = vmul.f32 %v1039_v18, %v743_v20 }
0x1455   :  { %747 = vrot.lane.b32.xlu0 %v745_v21, %s1044_s26 }
0x14c7   :  { %v748_v9 = vpop.permute.xlu0 %747 }
0x14c8   :  { %v750_v22 = vadd.f32 %v748_v9, %v153_v13 }
0x14ca   :  { %1040 = vtanh.f32 %v750_v22 }
0x14d4   :  { %v1041_v1 = vpop.eup %1040 }
0x14d5   :  { %754 = vrot.lane.b32.xlu1 %v1041_v1, %s1046_s29 }
0x1547   :  { %v755_v25 = vpop.permute.xlu1 %754 }
0x1548   :  { %v757_v27 = vmul.f32 %v755_v25, %v752_v24 }
0x154a   :  { %v759_v11 = vadd.f32 %v758_v26, %v757_v27 }
0x154c   :  { %v760_v28 = vpack.c.bf16 %v759_v11, %v759_v11 }
0x154e   :  { %766 = vrot.lane.b32.xlu0 %v760_v28, %s1046_s29 }
0x15c0   :  { %v767_v2 = vpop.permute.xlu0 %766 }
0x15c1   :  { %976 = vmatmul.mubr.msk.bf16.vlgmr.msra.gmra.mrb[20].mxu0 %vm78_vm1, %v767_v2 }
0x1694   :  { %v817_v0 = vpop.f32.mrb[20].mxu0 }
0x1695   :  { %v818_v30 = vadd.f32 %v858_v29, %v817_v0  ;;  %v977_v31 = vpop.f32.mrb[21].mxu0 }
0x1696   :  { %v820_v32 = vpop.f32.mrb[22].mxu0 }
0x1697   :  { %824 = vst.msk [vmem:[%s1251_s3] sm:$0xff] %vm823_vm2, %v818_v30  ;;  %v978_v4 = vpop.f32.mrb[23].mxu0 }

</bundles_post_ra>
